<compile_context>
chip_gen: v7x
topology: tpu7x:2x2x1
jax: 0.10.0
libtpu: 0.0.40
codegen_flags: <defaults>
</compile_context>

<pallas_src>
import jax
import jax.numpy as jnp
from jax import lax
from jax.experimental import pallas as pl
from jax.experimental.pallas import tpu as pltpu

_LANE = 128
_MIB = 1024 * 1024


def _vmem_limit_bytes(required_bytes):
    """Scoped-VMEM limit: generous headroom, never past ~3/4 of physical VMEM."""
    try:
        cap = int(pltpu.get_tpu_info().vmem_capacity_bytes)
    except Exception:  # non-TPU backend / missing field: assume the v7x floor.
        cap = 64 * _MIB
    cap_budget = max(cap * 3 // 4, 32 * _MIB)
    return int(min(max(2 * required_bytes, 32 * _MIB), cap_budget))


def _native_bf16_vpu():
    """True on chips whose VPU handles bf16 natively (v6e / v7x)."""
    try:
        kind = jax.devices()[0].device_kind.lower()
    except Exception:
        return True
    return not any(v in kind for v in ("v2", "v3", "v4", "v5"))


def _small_image_forward(x3, w1t, w2t, out_dtype, target_tile_bytes):
    """Whole image(s) per grid step; fc fused in-kernel.  x3: (N, C, S)."""
    N, C, S = x3.shape
    hidden = w1t.shape[1]
    itemsize = jnp.dtype(x3.dtype).itemsize
    per_image_bytes = C * S * itemsize

    # Pack several batch rows per step so each DMA is ~target_tile_bytes, while
    # keeping >= 2 grid steps when N >= 2 so megacore still shards the batch.
    bn = 1
    min_steps = 2 if N >= 2 else 1
    for cand in range(N, 0, -1):
        if (N % cand == 0 and cand * per_image_bytes <= target_tile_bytes
                and N // cand >= min_steps):
            bn = cand
            break
    grid = (N // bn,)

    def kernel(x_ref, w1t_ref, w2t_ref, o_ref):
        # Max over H*W in the input dtype (max is exact), then the tiny MLP.
        pooled = jnp.max(x_ref[...], axis=-1).astype(jnp.float32)      # (bn, C)
        h = jnp.dot(pooled, w1t_ref[...], preferred_element_type=jnp.float32)
        h = jnp.maximum(h, 0.0)
        y = jnp.dot(h, w2t_ref[...], preferred_element_type=jnp.float32)
        o_ref[...] = jax.nn.sigmoid(y).reshape(o_ref.shape).astype(o_ref.dtype)

    required = 2 * bn * per_image_bytes + 4 * C * hidden * 4 + 2 * bn * C * 4
    cost = pl.CostEstimate(
        flops=4 * N * C * hidden,
        transcendentals=N * C,
        bytes_accessed=int(N * per_image_bytes + 2 * C * hidden * 4
                           + N * C * jnp.dtype(out_dtype).itemsize))

    out_n1c = pl.pallas_call(
        kernel,
        out_shape=jax.ShapeDtypeStruct((N, 1, C), out_dtype),
        grid_spec=pltpu.PrefetchScalarGridSpec(
            num_scalar_prefetch=0,
            grid=grid,
            in_specs=[
                pl.BlockSpec((bn, C, S), lambda n: (n, 0, 0)),
                pl.BlockSpec((C, hidden), lambda n: (0, 0)),
                pl.BlockSpec((hidden, C), lambda n: (0, 0)),
            ],
            out_specs=pl.BlockSpec((bn, 1, C), lambda n: (n, 0, 0)),
        ),
        compiler_params=pltpu.CompilerParams(
            dimension_semantics=("parallel",),
            vmem_limit_bytes=_vmem_limit_bytes(required),
        ),
        cost_estimate=cost,
    )(x3, w1t, w2t)

    return out_n1c.reshape(N, C, 1, 1)


def _tiled_forward(x3, w1, w2, out_dtype, acc_dtype, target_tile_bytes,
                   max_slabs):
    """Large images: spatial tiling + running-max accumulator.  x3: (N, C, S)."""
    N, C, S = x3.shape
    itemsize = jnp.dtype(x3.dtype).itemsize

    # Spatial tile: lane multiple sized for ~target bytes per DMA, capped so the
    # statically-unrolled slab fold stays short (<= max_slabs slabs).
    s_ceil = pl.cdiv(S, _LANE) * _LANE
    ts = (target_tile_bytes // (C * itemsize)) // _LANE * _LANE
    ts = max(_LANE, min(ts, max_slabs * _LANE, s_ceil))
    num_slabs = ts // _LANE

    t_blocks = pl.cdiv(S, ts)                       # logical spatial blocks
    # Odd / unit batch: split the reduction in two so both v7x TensorCores get
    # work (one harmless extra partial on single-TC chips).
    nsplit = 2 if (N % 2 == 1 and t_blocks >= 2) else 1
    sb = pl.cdiv(t_blocks, nsplit)                  # spatial steps per split
    needs_mask = (nsplit * sb * ts) != S            # any tile overhangs x?

    def x_index(h, n, s):
        # Clamp so the DMA never starts past the end of x; logically-OOB steps
        # are fully masked to -inf inside the kernel.
        return (n, 0, jnp.minimum(h * sb + s, t_blocks - 1))

    def kernel(x_ref, o_ref, acc_ref):
        h_id = pl.program_id(0)
        s_id = pl.program_id(2)

        @pl.when(s_id == 0)
        def _init():
            acc_ref[...] = jnp.full(acc_ref.shape, -jnp.inf, acc_ref.dtype)

        # Fold this (1, C, ts) tile into the (1, C, 128) running-max accumulator
        # with lane-aligned elementwise maxima (pure VALU, co-issues with DMA).
        m = acc_ref[...]
        if needs_mask:
            lane_ids = lax.broadcasted_iota(jnp.int32, (1, C, _LANE), 2)
            limit = S - (h_id * sb + s_id) * ts     # valid lanes left in tile
        for i in range(num_slabs):                  # bounded static unroll
            slab = x_ref[:, :, i * _LANE:(i + 1) * _LANE].astype(acc_dtype)
            if needs_mask:
                slab = jnp.where(lane_ids < (limit - i * _LANE), slab, -jnp.inf)
            m = jnp.maximum(m, slab)
        acc_ref[...] = m

        @pl.when(s_id == pl.num_programs(2) - 1)
        def _finalize():
            o_ref[...] = (jnp.max(acc_ref[...], axis=-1)
                          .reshape(o_ref.shape).astype(o_ref.dtype))

    required = 3 * C * ts * itemsize + C * _LANE * 4 + 2 * nsplit * C * 4
    cost = pl.CostEstimate(
        flops=0, transcendentals=0,
        bytes_accessed=int(N * C * S * itemsize + nsplit * N * C * 4))

    partial = pl.pallas_call(
        kernel,
        out_shape=jax.ShapeDtypeStruct((nsplit, N, 1, C), jnp.float32),
        grid_spec=pltpu.PrefetchScalarGridSpec(
            num_scalar_prefetch=0,
            grid=(nsplit, N, sb),
            in_specs=[pl.BlockSpec((1, C, ts), x_index,
                                   pipeline_mode=pl.Buffered(3))],
            out_specs=pl.BlockSpec((1, 1, 1, C), lambda h, n, s: (h, n, 0, 0)),
            scratch_shapes=[pltpu.VMEM((1, C, _LANE), acc_dtype)],
        ),
        compiler_params=pltpu.CompilerParams(
            dimension_semantics=("parallel", "parallel", "arbitrary"),
            vmem_limit_bytes=_vmem_limit_bytes(required),
        ),
        cost_estimate=cost,
    )(x3)

    # Tiny epilogue (<<1% of the work): combine split halves and run the channel
    # MLP + sigmoid in XLA (frees weight VMEM, avoids degenerate M=1 matmuls).
    pooled = jnp.max(partial, axis=0).reshape(N, C)
    h = jnp.maximum(pooled @ w1.astype(jnp.float32).T, 0.0)
    y = jax.nn.sigmoid(h @ w2.astype(jnp.float32).T)
    return y.astype(out_dtype).reshape(N, C, 1, 1)


def channel_attention(x_nchw, w1, w2, *,
                      target_tile_bytes=2 * _MIB,
                      whole_image_limit_bytes=4 * _MIB,
                      max_slabs=64):
    """x_nchw: (N, C, H, W); w1: (C//16, C); w2: (C, C//16). Returns (N, C, 1, 1)."""
    N, C, H, W = x_nchw.shape
    hidden = w1.shape[0]
    assert hidden >= 1 and w1.shape == (hidden, C) and w2.shape == (C, hidden)

    out_dtype = x_nchw.dtype
    S = H * W
    x3 = x_nchw.reshape(N, C, S)                    # native dtype, read once
    itemsize = jnp.dtype(x3.dtype).itemsize
    per_image_bytes = C * S * itemsize

    # Max-accumulation dtype: bf16 max is exact, so keep bf16 on bf16-native
    # VPUs (v6e/v7x); v5e and non-f32/bf16 inputs use the f32 path.
    if x3.dtype == jnp.float32:
        acc_dtype = jnp.float32
    elif x3.dtype == jnp.bfloat16 and _native_bf16_vpu():
        acc_dtype = jnp.bfloat16
    else:
        acc_dtype = jnp.float32
        # TODO(synk): integer inputs follow the reference's f32 cast (inexact > 2^24).

    if per_image_bytes <= whole_image_limit_bytes:
        w1t = jnp.transpose(w1).astype(jnp.float32)   # (C, hidden)
        w2t = jnp.transpose(w2).astype(jnp.float32)   # (hidden, C)
        return _small_image_forward(x3, w1t, w2t, out_dtype, target_tile_bytes)
    return _tiled_forward(x3, w1, w2, out_dtype, acc_dtype,
                          target_tile_bytes, max_slabs)


def _reference(x_nchw, w1, w2):
    x = x_nchw.astype(jnp.float32)
    pooled = jnp.max(x, axis=(2, 3))                                  # (N, C)
    h = jnp.maximum(pooled @ w1.astype(jnp.float32).T, 0.0)           # (N, C//16)
    y = jax.nn.sigmoid(h @ w2.astype(jnp.float32).T)                  # (N, C)
    return y[:, :, None, None].astype(x_nchw.dtype)                   # (N, C, 1, 1)


if __name__ == "__main__":
    key = jax.random.PRNGKey(0)
    k_x, k_w1, k_w2 = jax.random.split(key, 3)

    # The module hard-codes ratio //16, so C=32 -> hidden=2.
    N, C, H, W = 2, 32, 16, 16
    hidden = C // 16

    x = jax.random.normal(k_x, (N, C, H, W), dtype=jnp.float32)
    # Conv2d(out, in, 1, bias=False) weights (out, in, 1, 1) squeezed to (out, in).
    w1 = jax.random.normal(k_w1, (hidden, C), dtype=jnp.float32) * 0.1
    w2 = jax.random.normal(k_w2, (C, hidden), dtype=jnp.float32) * 0.1

    # 1) Small-image path (whole image per block, fused fc).
    out = jax.block_until_ready(channel_attention(x, w1, w2))
    assert out.shape == (N, C, 1, 1)
    assert jnp.allclose(out, _reference(x, w1, w2), atol=1e-5, rtol=1e-5)

    # 1b) Same path with batch blocking (bn > 1).
    x4 = jax.random.normal(k_x, (4, C, H, W), dtype=jnp.float32)
    out1b = jax.block_until_ready(channel_attention(x4, w1, w2))
    assert jnp.allclose(out1b, _reference(x4, w1, w2), atol=1e-5, rtol=1e-5)

    # 2) Ragged H*W, no host-side padding (full-dim block handles it).
    x_ragged = jax.random.normal(key, (N, C, 9, 9), dtype=jnp.float32)
    out2 = jax.block_until_ready(channel_attention(x_ragged, w1, w2))
    assert jnp.allclose(out2, _reference(x_ragged, w1, w2), atol=1e-5, rtol=1e-5)

    # 3) Tiled-spatial path with in-kernel ragged-tail masking (forced small tiles).
    x_big = jax.random.normal(k_x, (N, C, 33, 33), dtype=jnp.float32)
    out3 = jax.block_until_ready(channel_attention(
        x_big, w1, w2, whole_image_limit_bytes=0, target_tile_bytes=32 * 1024))
    assert jnp.allclose(out3, _reference(x_big, w1, w2), atol=1e-5, rtol=1e-5)

    # 4) Tiled path with the 2-way spatial split (odd/unit batch -> both TCs).
    x_one = jax.random.normal(k_w1, (1, C, 33, 33), dtype=jnp.float32)
    out4 = jax.block_until_ready(channel_attention(
        x_one, w1, w2, whole_image_limit_bytes=0, target_tile_bytes=32 * 1024))
    assert jnp.allclose(out4, _reference(x_one, w1, w2), atol=1e-5, rtol=1e-5)

    print("KERNEL_OK")
</pallas_src>

<mosaic_0001>
module attributes {stable_mosaic.version = 11 : i64} {
  func.func @kernel(%arg0: i32, %arg1: memref<1x32x256xf32, #tpu.memory_space<vmem>>, %arg2: memref<32x2xf32, #tpu.memory_space<vmem>>, %arg3: memref<2x32xf32, #tpu.memory_space<vmem>>, %arg4: memref<1x1x32xf32, #tpu.memory_space<vmem>>) attributes {dimension_semantics = [#tpu.dimension_semantics<parallel>], iteration_bounds = array<i64: 2>, scalar_prefetch = 0 : i64, scratch_operands = 0 : i64, tpu.core_type = #tpu.core_type<tc>, window_params = [{transform_indices = @transform_0, window_bounds = array<i64: 1, 32, 256>}, {pipeline_mode = #tpu.pipeline_mode<synchronous>, transform_indices = @transform_1, window_bounds = array<i64: 32, 2>}, {pipeline_mode = #tpu.pipeline_mode<synchronous>, transform_indices = @transform_2, window_bounds = array<i64: 2, 32>}, {transform_indices = @transform_3, window_bounds = array<i64: 1, 1, 32>}]} {
    %c0 = arith.constant 0 : index
    %c0_0 = arith.constant 0 : index
    %c0_1 = arith.constant 0 : index
    %0 = vector.load %arg1[%c0, %c0_0, %c0_1] : memref<1x32x256xf32, #tpu.memory_space<vmem>>, vector<1x32x256xf32>
    %cst = arith.constant dense<0xFF800000> : vector<1x32xf32>
    %1 = vector.multi_reduction <maximumf>, %0, %cst [2] : vector<1x32x256xf32> to vector<1x32xf32>
    %c0_2 = arith.constant 0 : index
    %c0_3 = arith.constant 0 : index
    %2 = vector.load %arg2[%c0_2, %c0_3] : memref<32x2xf32, #tpu.memory_space<vmem>>, vector<32x2xf32>
    %cst_4 = arith.constant dense<0.000000e+00> : vector<1x2xf32>
    %3 = tpu.matmul %1, %2, %cst_4 {dimension_numbers = #tpu.dot_dimension_numbers<[1], [0], [0], [1], [0, 0, 1, 1], [], []>} : vector<1x32xf32>, vector<32x2xf32>, vector<1x2xf32> -> vector<1x2xf32>
    %cst_5 = arith.constant 0.000000e+00 : f32
    %4 = vector.broadcast %cst_5 : f32 to vector<1x2xf32>
    %5 = arith.maximumf %3, %4 : vector<1x2xf32>
    %c0_6 = arith.constant 0 : index
    %c0_7 = arith.constant 0 : index
    %6 = vector.load %arg3[%c0_6, %c0_7] : memref<2x32xf32, #tpu.memory_space<vmem>>, vector<2x32xf32>
    %cst_8 = arith.constant dense<0.000000e+00> : vector<1x32xf32>
    %7 = tpu.matmul %5, %6, %cst_8 {dimension_numbers = #tpu.dot_dimension_numbers<[1], [0], [0], [1], [0, 0, 1, 1], [], []>} : vector<1x2xf32>, vector<2x32xf32>, vector<1x32xf32> -> vector<1x32xf32>
    %8 = arith.negf %7 : vector<1x32xf32>
    %9 = math.exp %8 : vector<1x32xf32>
    %cst_9 = arith.constant 1.000000e+00 : f32
    %10 = vector.broadcast %cst_9 : f32 to vector<1x32xf32>
    %11 = arith.addf %10, %9 : vector<1x32xf32>
    %12 = arith.divf %10, %11 : vector<1x32xf32>
    %13 = vector.shape_cast %12 : vector<1x32xf32> to vector<1x1x32xf32>
    %c0_10 = arith.constant 0 : index
    %c0_11 = arith.constant 0 : index
    %c0_12 = arith.constant 0 : index
    %14 = vector.load %arg4[%c0_10, %c0_11, %c0_12] : memref<1x1x32xf32, #tpu.memory_space<vmem>>, vector<1x1x32xf32>
    tpu.vector_store %arg4[%c0_10, %c0_11, %c0_12], %13 {strides = array<i32>} : memref<1x1x32xf32, #tpu.memory_space<vmem>>, vector<1x1x32xf32>,
    return
  }
  func.func @transform_0(%arg0: i32) -> (i32, i32, i32) {
    %c0_i32 = arith.constant 0 : i32
    %c0_i32_0 = arith.constant 0 : i32
    %c0_i32_1 = arith.constant 0 : i32
    return %arg0, %c0_i32, %c0_i32_0 : i32, i32, i32
  }
  func.func @transform_1(%arg0: i32) -> (i32, i32) {
    %c0_i32 = arith.constant 0 : i32
    %c0_i32_0 = arith.constant 0 : i32
    %c0_i32_1 = arith.constant 0 : i32
    return %c0_i32, %c0_i32_0 : i32, i32
  }
  func.func @transform_2(%arg0: i32) -> (i32, i32) {
    %c0_i32 = arith.constant 0 : i32
    %c0_i32_0 = arith.constant 0 : i32
    %c0_i32_1 = arith.constant 0 : i32
    return %c0_i32, %c0_i32_0 : i32, i32
  }
  func.func @transform_3(%arg0: i32) -> (i32, i32, i32) {
    %c0_i32 = arith.constant 0 : i32
    %c0_i32_0 = arith.constant 0 : i32
    %c0_i32_1 = arith.constant 0 : i32
    return %arg0, %c0_i32, %c0_i32_0 : i32, i32, i32
  }
}

</mosaic_0001>

<bundles_post_ra>
// kernel: tpu_custom_call.1
= control target key start
LH: loop header
LB: loop body
LE: loop exit
PB: predicated region body
PF: predicated region fallthrough
CT: control target
= control target key end

     0   :  { %8 = vsyncpa [#allocation3], 0  ;;  %s884_s0 = inlined_call_operand.hbm [shape: f32[2,32,256], index: 0, kind: input, shape index: {}]   ;;  %s885_s1 = inlined_call_operand.vmem [shape: f32[32,2], index: 1, kind: input, shape index: {}]   ;;  %s886_s2 = inlined_call_operand.vmem [shape: f32[2,32], index: 2, kind: input, shape index: {}]   ;;  %s887_s3 = inlined_call_operand.hbm [shape: f32[2,1,32], index: 3, kind: output, shape index: {}]  }
   0x1   :  { %10 = vsyncpa [#allocation3 + $0x1], 0 }
   0x2   :  { %11 = vsyncpa [#allocation4], 0 }
   0x3   :  { %13 = vsyncpa [#allocation4 + $0x1], 0  ;;  %s708_s12 = smov 0   ;;  %s710_s13 = smov 0  }
   0x4   :  { %s712_s14 = smov 0   ;;  %s714_s15 = smov 0  }
   0x5 LB: > { %s729_s16 = sadd.s32 4294967295, %s679_s15   ;;  %s483_s17 = sadd.s32 4294967294, %s679_s15   ;;  %s679_s15 = sphi %s714_s15, %s900_s15   ;;  %s675_s14 = sphi %s712_s14, %s899_s14   ;;  %s671_s13 = sphi %s710_s13, %s898_s13   ;;  %s667_s12 = sphi %s708_s12, %s897_s12  }
   0x6   : > { %s733_s18 = sadd.s32 1, %s679_s15   ;;  %s26_s19 = sadd.s32 1, %s675_s14 }
   0x7   : > { %s23_s20 = ssub.s32 %s679_s15, %s733_s18  ;;  %p33_p0 = scmp.ne.s32.totalorder %s675_s14, %s671_s13 }
   0x8   : > { %p24_p1 = scmp.eq.s32.totalorder %s23_s20, 0  ;;  %p34_p2 = scmp.eq.s32.totalorder %s679_s15, 0 }
   0x9   : > { %p39_p3 = scmp.ne.s32.totalorder %s671_s13, %s667_s12  ;;  %p40_p4 = scmp.eq.s32.totalorder %s729_s16, 0 }
   0xa   : > { %s745_s21 = scalar_select %p24_p1, %s675_s14, %s26_s19  }
   0xb   : > { %p747_p5 = por %p34_p2, %p33_p0  ;;  %p751_p6 = por %p40_p4, %p39_p3 }
   0xc   : > { %p105_p7 = scmp.eq.s32.totalorder %s729_s16, 1  ;;  %p111_p8 = scmp.eq.s32.totalorder %s483_s17, 1 }
   0xd   : > { %p540_p10 = scmp.lt.s32.totalorder %s679_s15, 2  ;;  %s137_s26 = sand.u32 1, %s675_s14  }
   0xe   : > { %p758_p11 = por %p105_p7, %p33_p0  ;;  %p762_p12 = por %p111_p8, %p39_p3 }
   0xf   : > { %s498_s27 = sshll.u32 %s679_s15, 10  ;;  %s486_s28 = sshll.u32 %s137_s26, 6 }
  0x10   : > { %s891_s24 = scalar_select %p758_p11, 1, 0 }
  0x11   : > { %s892_s25 = scalar_select %p762_p12, 1, 0 }
  0x12   : > { %s771_s4 = scalar_lea.hbm %s884_s0, %s498_s27  ;;  %s141_s5 = scalar_lea.vmem [#allocation2], %s486_s28 }
  0x13   : > { %s148_s6 = sshll.u32 %s141_s5, 4  ;;  %p775_p13 = pnand %p540_p10, %p747_p5  ;;  %s779_s6 = int_to_ptr.vmem [resolvable:$true] %s148_s6 }
  0x14   : > { %s781_s8 = scalar_lea.sflag [#allocation3], %s137_s26  ;;  %s583_s9 = scalar_lea.hbm %s771_s4, 1024 }
  0x15   : > { %p584_p0 = scmp.ne.s32.totalorder %s771_s4, %s583_s9  ;;  %p585_p1 = pneg %p775_p13 }
  0x16   : > { %s588_s17 = scalar_lea.hbm %s884_s0, 2048  ;;  %p589_p4 = scmp.lt.u32.totalorder %s771_s4, %s884_s0 }
  0x17   : > { %p586_p2 = pnand %p585_p1, %p584_p0  ;;  %p590_p5 = scmp.lt.u32.totalorder %s588_s17, %s583_s9 }
  0x18   : > { %p592_p8 = scmp.lt.u32.totalorder %s583_s9, %s771_s4 }
  0x19   : > { %p587_p3 = pneg %p586_p2  ;;  %p591_p7 = por %p590_p5, %p589_p4 }
  0x1b   : > { %p593_p10 = por %p592_p8, %p591_p7 }
  0x1d   : > { %p594_p9 = pnand %p593_p10, %p587_p3 }
  0x1f   : > { %597 = shalt.err (!%p594_p9)
}
  0x20   : > { %s598_s22 = scalar_lea.vmem %s779_s6, 1024  ;;  %s681_s26 = smov [#allocation2]  }
  0x21   : > { %p599_p0 = scmp.ne.s32.totalorder %s779_s6, %s598_s22  ;;  %s603_s27 = sshll.u32 %s681_s26, 4  ;;  %s604_s27 = int_to_ptr.vmem [resolvable:$false] %s603_s27 }
  0x22   : > { %s605_s28 = scalar_lea.vmem %s604_s27, 2048  ;;  %p606_p11 = scmp.lt.s32.totalorder %s779_s6, %s604_s27 }
  0x23   : > { %p601_p2 = pnand %p599_p0, %p585_p1  ;;  %p607_p4 = scmp.lt.s32.totalorder %s605_s28, %s598_s22 }
  0x25   : > { %p602_p12 = pneg %p601_p2  ;;  %p608_p5 = por %p607_p4, %p606_p11 }
  0x27   : > { %p609_p7 = pnand %p608_p5, %p602_p12 }
  0x29   : > { %612 = shalt.err (!%p609_p7)
}
  0x2a   : > { %s682_s29 = smov 256   ;;  %s683_s30 = smov 16  }
  0x2b   : > { %535 = dma.hbm_to_vmem [thread:$0]  (!%p775_p13), %s771_s4, 1024, %s779_s6, %s781_s8, %s682_s29, %s682_s29, %s683_s30  }
  0x2c   : > { %p489_p9 = scmp.ge.s32.totalorder %s679_s15, 1  ;;  %p156_p1 = scmp.lt.s32.totalorder %s679_s15, 3 }
  0x2e   : > { %p157_p3 = pnand %p489_p9, %p156_p1 }
  0x2f   : > { %s812_s5 = sand.u32 (!%p157_p3), 1, %s671_s13  }
  0x30   : > { %160 = sbr.rel (%p157_p3) target bundleno = 676 (0x2a4), region = 32  ;;  %s490_s9 = sshll.u32 (!%p157_p3), %s812_s5, 6 }
  0x31   : > { %s163_s10 = scalar_lea.sflag (!%p157_p3), [#allocation3], %s812_s5  ;;  %s166_s11 = scalar_lea.vmem (!%p157_p3), [#allocation2], %s490_s9 }
  0x37   : > { %658 = dma.done.wait (%p751_p6), %s163_s10, 1024  }
  0x38   : > { %660 = vsyncadd (%p751_p6), %s163_s10, 4294966272  ;;  %v188_v0 = vld [vmem:[%s166_s11] sm:$0xff]  ;;  %v189_v1 = vld [vmem:[%s166_s11 + $0x8] sm:$0xff]  ;;  %v684_v15 = vmov 0.0|0.0   ;;  %vm685_vm0 = vmmov 0   ;;  %v686_v19 = vmov 0.0   ;;  %v216_v20 = vlaneseq }
  0x39   : > { %v192_v2 = vld [vmem:[%s166_s11 + $0x20] sm:$0xff]  ;;  %v196_v3 = vmax.f32 %v188_v0, %v189_v1  ;;  %v193_v4 = vld [vmem:[%s166_s11 + $0x28] sm:$0xff]  ;;  %v190_v5 = vld [vmem:[%s166_s11 + $0x10] sm:$0xff]  ;;  %522 = vmatprep.subr.bf16.mxu0 %v684_v15  ;;  %514 = vmatprep.mubr.msk.f32.mxu0 %vm685_vm0, %v686_v19  ;;  %vm227_vm1 = vcmask 130112   ;;  %vm234_vm2 = vcmask 195712   ;;  %vm241_vm3 = vcmask 261312  }
  0x3a   : > { %v191_v6 = vld [vmem:[%s166_s11 + $0x18] sm:$0xff]  ;;  %v202_v7 = vmax.f32 %v192_v2, %v193_v4  ;;  %v194_v8 = vld [vmem:[%s166_s11 + $0x30] sm:$0xff]  ;;  %v208_v12 = vld [vmem:[%s885_s1] sm:$0xff]  ;;  %517 = vmatprep.subr.mxu1 %v686_v19  ;;  %519 = vmatprep.mubr.msk.f32.mxu1 %vm685_vm0, %v686_v19  ;;  %v217_v21 = vand.u32 127, %v216_v20  ;;  %v219_v22 = vshrl.u32 %v216_v20, 7  ;;  %vm243_vm4 = vcmask 261120  }
  0x3b   : > { %v195_v9 = vld [vmem:[%s166_s11 + $0x38] sm:$0xff]  ;;  %197 = vmax.xlane.f32.xlu0 %v196_v3  ;;  %v199_v10 = vmax.f32 %v190_v5, %v191_v6  ;;  %v209_v13 = vld [vmem:[%s885_s1 + $0x8] sm:$0xff]  ;;  %v210_v16 = vld [vmem:[%s885_s1 + $0x10] sm:$0xff]  ;;  %vm322_vm5 = vcmask 1041408   ;;  %vm318_vm6 = vcmask 15360   ;;  %s495_s27 = sshll.u32 %s729_s16, 4 }
  0x3c   : > { %203 = vmax.xlane.f32.xlu1 %v202_v7  ;;  %v205_v11 = vmax.f32 %v194_v8, %v195_v9  ;;  %v523_v14 = vpack.c.bf16 %v209_v13, %v208_v12  ;;  %v211_v17 = vld [vmem:[%s885_s1 + $0x18] sm:$0xff]  ;;  %v222_v23 = vadd.s32 4294967288, %v217_v21  ;;  %v229_v24 = vadd.s32 4294967280, %v217_v21  ;;  %v317_v41 = vld [vmem:[%s886_s2] sm:$0x3]  ;;  %s187_s28 = scalar_lea.vmem [#allocation5], %s812_s5  ;;  %s840_s10 = scalar_lea.hbm %s887_s3, %s495_s27 }
  0x3d   : > { %v526_v18 = vpack.c.bf16 %v211_v17, %v210_v16  ;;  %v236_v25 = vadd.s32 4294967272, %v217_v21  ;;  %v220_v27 = vsub.s32 %v217_v21, %v219_v22  ;;  %518 = vmatpush3.msk.msra.mxu1 %vm322_vm5, %v317_v41  ;;  %s417_s29 = sshll.u32 %s187_s28, 4  ;;  %vm402_vm7 = vcmask 253952   ;;  %s405_s11 = scalar_lea.sflag [#allocation4], %s812_s5  ;;  %s842_s29 = int_to_ptr.vmem [resolvable:$true] %s417_s29 }
  0x3e   : > { %524 = vmatpush3.bf16.msra.mxu0 %v523_v14  ;;  %v225_v29 = vsub.s32 %v222_v23, %v219_v22  ;;  %v232_v30 = vsub.s32 %v229_v24, %v219_v22  ;;  %s613_s4 = scalar_lea.vmem %s842_s29, 16  ;;  %p894_p11 = scmp.ne.s32.totalorder %s891_s24, 0 }
  0x3f   : > { %200 = vmax.xlane.f32.xlu0 %v199_v10  ;;  %525 = vmatprep.subr.bf16.mxu0 %v684_v15  ;;  %v239_v31 = vsub.s32 %v236_v25, %v219_v22  ;;  %p614_p6 = scmp.ne.s32.totalorder %s842_s29, %s613_s4  ;;  %s687_s16 = smov [#allocation5]  }
  0x40   : > { %206 = vmax.xlane.f32.xlu1 %v205_v11  ;;  %s617_s6 = sshll.u32 %s687_s16, 4  ;;  %s618_s6 = int_to_ptr.vmem [resolvable:$false] %s617_s6 }
  0x41   : > { %p615_p12 = pnand %p614_p6, %p894_p11  ;;  %s619_s23 = scalar_lea.vmem %s618_s6, 32 }
  0x42   : > { %527 = vmatpush3.bf16.msra.mxu0 %v526_v18  ;;  %p620_p8 = scmp.lt.s32.totalorder %s842_s29, %s618_s6  ;;  %p621_p10 = scmp.lt.s32.totalorder %s619_s23, %s613_s4 }
  0x43   : > { %p616_p13 = pneg %p615_p12 }
  0x44   : > { %p622_p0 = por %p621_p10, %p620_p8 }
  0x46   : > { %p623_p2 = pnand %p622_p0, %p616_p13 }
  0xc8   : > { %v198_v26 = vpop.xlane.xlu0 %197 }
  0xc9   : > { %v204_v28 = vpop.xlane.xlu1 %203  ;;  %v221_v33 = vrot.slane %v198_v26, %v220_v27 }
  0xca   : > { %v233_v36 = vrot.slane %v204_v28, %v232_v30 }
  0xcc   : > { %v201_v32 = vpop.xlane.xlu0 %200 }
  0xcd   : > { %v226_v34 = vrot.slane %v201_v32, %v225_v29  ;;  %v207_v35 = vpop.xlane.xlu1 %206 }
  0xce   : > { %v240_v37 = vrot.slane %v207_v35, %v239_v31 }
  0xcf   : > { %v228_v38 = vsel %vm227_vm1, %v226_v34, %v221_v33 }
  0xd0   : > { %v235_v39 = vsel %vm234_vm2, %v233_v36, %v228_v38 }
  0xd1   : > { %v242_v40 = vsel %vm241_vm3, %v240_v37, %v235_v39 }
  0xd2   : > { %515 = vmatmul.mubr.msk.f32.vlgmr.msra.gmra.mrb[0].mxu0 %vm243_vm4, %v242_v40 }
 0x1a5   : > { %v312_v42 = vpop.f32.mrb[0].mxu0 }
 0x1a6   : > { %v316_v43 = vmax.f32 %v312_v42, 0.0  ;;  %v516_v44 = vpop.f32.mrb[1].mxu0 }
 0x1a8   : > { %520 = vmatmul.mubr.msk.f32.vlgmr.msra.gmra.mrb[0].mxu1 %vm318_vm6, %v316_v43 }
 0x27b   : > { %v392_v45 = vpop.f32.mrb[0].mxu1 }
 0x27c   : > { %v494_v46 = vmul.f32 -1.442695, %v392_v45  ;;  %v521_v47 = vpop.f32.mrb[1].mxu1 }
 0x27e   : > { %579 = vpow2.f32 %v494_v46 }
 0x288   : > { %v580_v48 = vpop.eup %579 }
 0x289   : > { %v399_v49 = vadd.f32 1.0, %v580_v48 }
 0x28b   : > { %581 = vrcp.f32 %v399_v49 }
 0x295   : > { %v582_v50 = vpop.eup %581 }
 0x296   : > { %403 = vst.msk [vmem:[%s187_s28] sm:$0x1] %vm402_vm7, %v582_v50 }
 0x297   : > { %626 = shalt.err (!%p623_p2)
}
 0x298   : > { %s627_s5 = scalar_lea.hbm %s840_s10, 16  ;;  %s631_s17 = scalar_lea.hbm %s887_s3, 32 }
 0x299   : > { %p628_p4 = scmp.ne.s32.totalorder %s840_s10, %s627_s5  ;;  %p632_p9 = scmp.lt.u32.totalorder %s840_s10, %s887_s3 }
 0x29a   : > { %p633_p1 = scmp.lt.u32.totalorder %s631_s17, %s627_s5  ;;  %p635_p6 = scmp.lt.u32.totalorder %s627_s5, %s840_s10 }
 0x29b   : > { %p629_p5 = pnand %p628_p4, %p894_p11 }
 0x29c   : > { %p634_p3 = por %p633_p1, %p632_p9 }
 0x29d   : > { %p630_p7 = pneg %p629_p5 }
 0x29e   : > { %p636_p12 = por %p635_p6, %p634_p3 }
 0x2a0   : > { %p637_p13 = pnand %p636_p12, %p630_p7 }
 0x2a2   : > { %640 = shalt.err (!%p637_p13)
}
 0x2a3   : > { %530 = dma.vmem_to_hbm [thread:$0]  (%p894_p11), %s842_s29, 16, %s840_s10, %s405_s11  }
 0x2a4 PF: > { %s429_s22 = sand.u32 1, %s667_s12   ;;  %p895_p8 = scmp.ne.s32.totalorder %s892_s25, 0 }
 0x2a5   : > { %p896_p10 = scmp.ge.s32.totalorder %s679_s15, 2  ;;  %s430_s26 = scalar_lea.sflag [#allocation4], %s429_s22 }
 0x2a7   : > { %p537_p0 = pnand %p896_p10, %p895_p8 }
 0x2a9   : > { %662 = dma.done.wait (!%p537_p0), %s430_s26, 16  }
 0x2aa   : > { %664 = vsyncadd (!%p537_p0), %s430_s26, 4294967280  ;;  %p16_p2 = scmp.ge.s32.totalorder %s733_s18, 4   ;;  %s897_s12 = smov %s671_s13 }
 0x2ab   : > { %s898_s13 = smov %s675_s14  ;;  %s899_s14 = smov %s745_s21 }
 0x2ac   : > { %s900_s15 = smov %s733_s18  ;;  %18 = sbr.rel (!%p16_p2) target bundleno = 5 (0x5), region = 77 }
 0x2b3   :  { %434 = vsyncpa [#allocation3], 1 }
 0x2b4   :  { %436 = vsyncpa [#allocation3 + $0x1], 1 }
 0x2b5   :  { %437 = vsyncpa [#allocation4], 1 }
 0x2b6   :  { %439 = vsyncpa [#allocation4 + $0x1], 1 }

</bundles_post_ra>
